<compile_context>
chip_gen: v7x
topology: tpu7x:2x2x1
jax: 0.10.0
libtpu: 0.0.40
codegen_flags: <defaults>
</compile_context>

<pallas_src>
import functools

import jax
import jax.numpy as jnp
from jax.experimental import pallas as pl
from jax.experimental.pallas import tpu as pltpu


def _round_up(x, m):
    return ((x + m - 1) // m) * m


def _transition_kernel(x_ref, slab_ref, out_ref, h_all_scr, *,
                       input_dim, hidden_dim, seq_len, out_pad,
                       r_wih, r_whh, r_bg, r_whead, r_bhead):
    """Whole rollout in one invocation. All weights come from one packed slab
    (static, sublane-aligned row slices)."""
    hd = hidden_dim

    w_ih_t = slab_ref[pl.ds(r_wih, input_dim), :]   # (in, W)
    w_hh_t = slab_ref[pl.ds(r_whh, hd), :]          # (hidden, W)
    b_gate = slab_ref[pl.ds(r_bg, 1), :]            # (1, W)

    # Input projection for ALL timesteps, hoisted out of the recurrence:
    # one (H, in) @ (in, W) MXU push + bias. Kept as a value (a few vregs).
    gates_x = (jnp.dot(x_ref[...], w_ih_t,
                       preferred_element_type=jnp.float32) + b_gate)  # (H, W)

    h = jnp.zeros((1, hd), jnp.float32)
    c = jnp.zeros((1, hd), jnp.float32)

    # Fully unrolled recurrence with static slices; only h @ W_hh^T and the
    # elementwise gates sit on the serial critical path.
    for t in range(seq_len):
        gates = gates_x[t:t + 1, :] + jnp.dot(
            h, w_hh_t, preferred_element_type=jnp.float32)        # (1, W)

        # Nonlinearities applied once on the wide vreg (EUP), then static
        # lane slices in torch LSTMCell gate order (i, f, g, o).
        sig = jax.nn.sigmoid(gates)
        tnh = jnp.tanh(gates)
        i_g = sig[:, 0 * hd:1 * hd]
        f_g = sig[:, 1 * hd:2 * hd]
        g_g = tnh[:, 2 * hd:3 * hd]
        o_g = sig[:, 3 * hd:4 * hd]

        c = f_g * c + i_g * g_g
        h = o_g * jnp.tanh(c)

        # Static-offset store; off the critical path. Every row of the
        # scratch is written because seq_len == scratch row count (both are
        # derived from state_action.shape[0]).
        h_all_scr[pl.ds(t, 1), :] = h

    # Fused output heads, hoisted: one (H, hidden) @ (hidden, out_pad) matmul
    # against zero-padded columns -> lane-dense, unmasked (H, 128) store.
    w_head_t = slab_ref[pl.ds(r_whead, hd), :out_pad]
    b_head = slab_ref[pl.ds(r_bhead, 1), :out_pad]
    out_ref[...] = (jnp.dot(h_all_scr[...], w_head_t,
                            preferred_element_type=jnp.float32)
                    + b_head).astype(out_ref.dtype)


def prepare_transition_params(params):
    """One-time parameter packing (hoisted out of the call path): transpose,
    fuse biases / heads, zero-pad, and stack every constant operand into a
    single sublane-aligned (rows, W) f32 slab -> one weight DMA per call."""
    input_dim = params["w_ih"].shape[1]
    hidden_dim = params["w_hh"].shape[1]
    output_dim = params["w_uvw"].shape[0]

    slab_w = _round_up(max(4 * hidden_dim, 2 * output_dim, 128), 128)
    out_pad = _round_up(max(2 * output_dim, 128), 128)   # lane-dense out width

    w_ih_t = jnp.asarray(params["w_ih"], jnp.float32).T          # (in, 4h)
    w_hh_t = jnp.asarray(params["w_hh"], jnp.float32).T          # (hidden, 4h)
    b_gate = (jnp.asarray(params["b_ih"], jnp.float32)
              + jnp.asarray(params["b_hh"], jnp.float32)).reshape(1, -1)
    w_head_t = jnp.concatenate(
        [jnp.asarray(params["w_uvw"], jnp.float32).T,
         jnp.asarray(params["w_pqr"], jnp.float32).T], axis=1)   # (hidden, 2*out)
    b_head = jnp.concatenate(
        [jnp.asarray(params["b_uvw"], jnp.float32),
         jnp.asarray(params["b_pqr"], jnp.float32)]).reshape(1, -1)

    sections = [w_ih_t, w_hh_t, b_gate, w_head_t, b_head]
    offsets, padded, off = [], [], 0
    for s in sections:
        rows = _round_up(s.shape[0], 8)      # keep each section 8-row aligned
        offsets.append(off)
        padded.append(jnp.pad(s, ((0, rows - s.shape[0]),
                                  (0, slab_w - s.shape[1]))))
        off += rows
    slab = jnp.concatenate(padded, axis=0)   # (rows_total, slab_w)

    meta = dict(input_dim=input_dim, hidden_dim=hidden_dim,
                output_dim=output_dim, out_pad=out_pad,
                r_wih=offsets[0], r_whh=offsets[1], r_bg=offsets[2],
                r_whead=offsets[3], r_bhead=offsets[4])
    return slab, meta


def transition_forward(state_action, slab, meta):
    """state_action: (H, input_dim) f32. Returns (H, 2*output_dim) f32 where
    row t == concat([uvw_t, pqr_t]) of the LSTMCell rollout."""
    H = state_action.shape[0]
    hidden_dim = meta["hidden_dim"]
    out_pad = meta["out_pad"]

    kernel = functools.partial(
        _transition_kernel,
        input_dim=meta["input_dim"], hidden_dim=hidden_dim, seq_len=H,
        out_pad=out_pad, r_wih=meta["r_wih"], r_whh=meta["r_whh"],
        r_bg=meta["r_bg"], r_whead=meta["r_whead"], r_bhead=meta["r_bhead"])

    out_padded = pl.pallas_call(
        kernel,
        out_shape=jax.ShapeDtypeStruct((H, out_pad), jnp.float32),
        # Gridless call: each whole array is placed in VMEM with a single DMA
        # (x + packed weight slab), no pipeline double-buffers or extra sems.
        scratch_shapes=[pltpu.VMEM((H, hidden_dim), jnp.float32)],  # h_t history
    )(state_action, slab)

    return out_padded[:, :2 * meta["output_dim"]]


def _reference_forward(state_action, params):
    """Pure-JAX reference matching torch.nn.LSTMCell + 2 Linear heads."""
    hidden_dim = params["w_hh"].shape[1]

    def step(carry, x):
        h, c = carry
        gates = (x @ params["w_ih"].T + params["b_ih"]
                 + h @ params["w_hh"].T + params["b_hh"])
        i_g, f_g, g_g, o_g = jnp.split(gates, 4, axis=-1)
        i_g, f_g, o_g = map(jax.nn.sigmoid, (i_g, f_g, o_g))
        g_g = jnp.tanh(g_g)
        c_new = f_g * c + i_g * g_g
        h_new = o_g * jnp.tanh(c_new)
        uvw = h_new @ params["w_uvw"].T + params["b_uvw"]
        pqr = h_new @ params["w_pqr"].T + params["b_pqr"]
        return (h_new, c_new), jnp.concatenate([uvw, pqr], axis=-1)

    init = (jnp.zeros((hidden_dim,), jnp.float32),
            jnp.zeros((hidden_dim,), jnp.float32))
    _, ys = jax.lax.scan(step, init, state_action)
    return ys


if __name__ == "__main__":
    # Small shapes consistent with the module: seq H=8, input_dim=16,
    # hidden_dim=32, output_dim=3 (uvw / pqr are 3-vectors).
    H, input_dim, hidden_dim, output_dim = 8, 16, 32, 3

    key = jax.random.PRNGKey(0)
    keys = jax.random.split(key, 9)
    scale = 0.1
    params = {
        "w_ih": scale * jax.random.normal(keys[0], (4 * hidden_dim, input_dim), jnp.float32),
        "w_hh": scale * jax.random.normal(keys[1], (4 * hidden_dim, hidden_dim), jnp.float32),
        "b_ih": scale * jax.random.normal(keys[2], (4 * hidden_dim,), jnp.float32),
        "b_hh": scale * jax.random.normal(keys[3], (4 * hidden_dim,), jnp.float32),
        "w_uvw": scale * jax.random.normal(keys[4], (output_dim, hidden_dim), jnp.float32),
        "b_uvw": scale * jax.random.normal(keys[5], (output_dim,), jnp.float32),
        "w_pqr": scale * jax.random.normal(keys[6], (output_dim, hidden_dim), jnp.float32),
        "b_pqr": scale * jax.random.normal(keys[7], (output_dim,), jnp.float32),
    }
    state_action = jax.random.normal(keys[8], (H, input_dim), jnp.float32)

    # One-time packing (hoisted out of the per-call path).
    slab, meta = prepare_transition_params(params)

    fwd = jax.jit(lambda x, w: transition_forward(x, w, meta))
    out = jax.block_until_ready(fwd(state_action, slab))

    ref = _reference_forward(state_action, params)
    assert out.shape == (H, 2 * output_dim), out.shape
    assert jnp.allclose(out, ref, atol=1e-5, rtol=1e-5), (
        float(jnp.max(jnp.abs(out - ref))))

    # TODO(synk): `step`/`rotate`/quaternion helpers are inference-time
    # scalar rigid-body integration utilities not used in forward(); not
    # ported to the kernel.
    print("KERNEL_OK")
</pallas_src>

<mosaic_0001>
module attributes {stable_mosaic.version = 11 : i64} {
  func.func @_transition_kernel(%arg0: memref<8x16xf32, #tpu.memory_space<vmem>>, %arg1: memref<96x128xf32, #tpu.memory_space<vmem>>, %arg2: memref<8x128xf32, #tpu.memory_space<vmem>>, %arg3: memref<8x32xf32, #tpu.memory_space<vmem>>) attributes {dimension_semantics = [], scalar_prefetch = 0 : i64, scratch_operands = 1 : i64, tpu.core_type = #tpu.core_type<tc>} {
    %c0 = arith.constant 0 : index
    %c0_0 = arith.constant 0 : index
    %0 = vector.load %arg1[%c0, %c0_0] : memref<96x128xf32, #tpu.memory_space<vmem>>, vector<16x128xf32>
    %c16 = arith.constant 16 : index
    %c0_1 = arith.constant 0 : index
    %1 = vector.load %arg1[%c16, %c0_1] : memref<96x128xf32, #tpu.memory_space<vmem>>, vector<32x128xf32>
    %c48 = arith.constant 48 : index
    %c0_2 = arith.constant 0 : index
    %2 = vector.load %arg1[%c48, %c0_2] : memref<96x128xf32, #tpu.memory_space<vmem>>, vector<1x128xf32>
    %c0_3 = arith.constant 0 : index
    %c0_4 = arith.constant 0 : index
    %3 = vector.load %arg0[%c0_3, %c0_4] : memref<8x16xf32, #tpu.memory_space<vmem>>, vector<8x16xf32>
    %cst = arith.constant dense<0.000000e+00> : vector<8x128xf32>
    %4 = tpu.matmul %3, %0, %cst {dimension_numbers = #tpu.dot_dimension_numbers<[1], [0], [0], [1], [0, 0, 1, 1], [], []>} : vector<8x16xf32>, vector<16x128xf32>, vector<8x128xf32> -> vector<8x128xf32>
    %5 = vector.broadcast %2 : vector<1x128xf32> to vector<8x128xf32>
    %6 = arith.addf %4, %5 : vector<8x128xf32>
    %cst_5 = arith.constant 0.000000e+00 : f32
    %7 = vector.broadcast %cst_5 : f32 to vector<1x32xf32>
    %cst_6 = arith.constant 0.000000e+00 : f32
    %8 = vector.broadcast %cst_6 : f32 to vector<1x32xf32>
    %9 = vector.extract_strided_slice %6 {offsets = [0, 0], sizes = [1, 128], strides = [1, 1]} : vector<8x128xf32> to vector<1x128xf32>
    %cst_7 = arith.constant dense<0.000000e+00> : vector<1x128xf32>
    %10 = tpu.matmul %7, %1, %cst_7 {dimension_numbers = #tpu.dot_dimension_numbers<[1], [0], [0], [1], [0, 0, 1, 1], [], []>} : vector<1x32xf32>, vector<32x128xf32>, vector<1x128xf32> -> vector<1x128xf32>
    %11 = arith.addf %9, %10 : vector<1x128xf32>
    %12 = arith.negf %11 : vector<1x128xf32>
    %13 = math.exp %12 : vector<1x128xf32>
    %cst_8 = arith.constant 1.000000e+00 : f32
    %14 = vector.broadcast %cst_8 : f32 to vector<1x128xf32>
    %15 = arith.addf %14, %13 : vector<1x128xf32>
    %16 = arith.divf %14, %15 : vector<1x128xf32>
    %17 = math.tanh %11 : vector<1x128xf32>
    %18 = vector.extract_strided_slice %16 {offsets = [0, 0], sizes = [1, 32], strides = [1, 1]} : vector<1x128xf32> to vector<1x32xf32>
    %19 = vector.extract_strided_slice %16 {offsets = [0, 32], sizes = [1, 32], strides = [1, 1]} : vector<1x128xf32> to vector<1x32xf32>
    %20 = vector.extract_strided_slice %17 {offsets = [0, 64], sizes = [1, 32], strides = [1, 1]} : vector<1x128xf32> to vector<1x32xf32>
    %21 = vector.extract_strided_slice %16 {offsets = [0, 96], sizes = [1, 32], strides = [1, 1]} : vector<1x128xf32> to vector<1x32xf32>
    %22 = arith.mulf %19, %8 : vector<1x32xf32>
    %23 = arith.mulf %18, %20 : vector<1x32xf32>
    %24 = arith.addf %22, %23 : vector<1x32xf32>
    %25 = math.tanh %24 : vector<1x32xf32>
    %26 = arith.mulf %21, %25 : vector<1x32xf32>
    %c0_9 = arith.constant 0 : index
    %c0_10 = arith.constant 0 : index
    %27 = vector.load %arg3[%c0_9, %c0_10] : memref<8x32xf32, #tpu.memory_space<vmem>>, vector<1x32xf32>
    tpu.vector_store %arg3[%c0_9, %c0_10], %26 {strides = array<i32>} : memref<8x32xf32, #tpu.memory_space<vmem>>, vector<1x32xf32>,
    %28 = vector.extract_strided_slice %6 {offsets = [1, 0], sizes = [1, 128], strides = [1, 1]} : vector<8x128xf32> to vector<1x128xf32>
    %cst_11 = arith.constant dense<0.000000e+00> : vector<1x128xf32>
    %29 = tpu.matmul %26, %1, %cst_11 {dimension_numbers = #tpu.dot_dimension_numbers<[1], [0], [0], [1], [0, 0, 1, 1], [], []>} : vector<1x32xf32>, vector<32x128xf32>, vector<1x128xf32> -> vector<1x128xf32>
    %30 = arith.addf %28, %29 : vector<1x128xf32>
    %31 = arith.negf %30 : vector<1x128xf32>
    %32 = math.exp %31 : vector<1x128xf32>
    %cst_12 = arith.constant 1.000000e+00 : f32
    %33 = vector.broadcast %cst_12 : f32 to vector<1x128xf32>
    %34 = arith.addf %33, %32 : vector<1x128xf32>
    %35 = arith.divf %33, %34 : vector<1x128xf32>
    %36 = math.tanh %30 : vector<1x128xf32>
    %37 = vector.extract_strided_slice %35 {offsets = [0, 0], sizes = [1, 32], strides = [1, 1]} : vector<1x128xf32> to vector<1x32xf32>
    %38 = vector.extract_strided_slice %35 {offsets = [0, 32], sizes = [1, 32], strides = [1, 1]} : vector<1x128xf32> to vector<1x32xf32>
    %39 = vector.extract_strided_slice %36 {offsets = [0, 64], sizes = [1, 32], strides = [1, 1]} : vector<1x128xf32> to vector<1x32xf32>
    %40 = vector.extract_strided_slice %35 {offsets = [0, 96], sizes = [1, 32], strides = [1, 1]} : vector<1x128xf32> to vector<1x32xf32>
    %41 = arith.mulf %38, %24 : vector<1x32xf32>
    %42 = arith.mulf %37, %39 : vector<1x32xf32>
    %43 = arith.addf %41, %42 : vector<1x32xf32>
    %44 = math.tanh %43 : vector<1x32xf32>
    %45 = arith.mulf %40, %44 : vector<1x32xf32>
    %c1 = arith.constant 1 : index
    %c0_13 = arith.constant 0 : index
    %46 = vector.load %arg3[%c1, %c0_13] : memref<8x32xf32, #tpu.memory_space<vmem>>, vector<1x32xf32>
    tpu.vector_store %arg3[%c1, %c0_13], %45 {strides = array<i32>} : memref<8x32xf32, #tpu.memory_space<vmem>>, vector<1x32xf32>,
    %47 = vector.extract_strided_slice %6 {offsets = [2, 0], sizes = [1, 128], strides = [1, 1]} : vector<8x128xf32> to vector<1x128xf32>
    %cst_14 = arith.constant dense<0.000000e+00> : vector<1x128xf32>
    %48 = tpu.matmul %45, %1, %cst_14 {dimension_numbers = #tpu.dot_dimension_numbers<[1], [0], [0], [1], [0, 0, 1, 1], [], []>} : vector<1x32xf32>, vector<32x128xf32>, vector<1x128xf32> -> vector<1x128xf32>
    %49 = arith.addf %47, %48 : vector<1x128xf32>
    %50 = arith.negf %49 : vector<1x128xf32>
    %51 = math.exp %50 : vector<1x128xf32>
    %cst_15 = arith.constant 1.000000e+00 : f32
    %52 = vector.broadcast %cst_15 : f32 to vector<1x128xf32>
    %53 = arith.addf %52, %51 : vector<1x128xf32>
    %54 = arith.divf %52, %53 : vector<1x128xf32>
    %55 = math.tanh %49 : vector<1x128xf32>
    %56 = vector.extract_strided_slice %54 {offsets = [0, 0], sizes = [1, 32], strides = [1, 1]} : vector<1x128xf32> to vector<1x32xf32>
    %57 = vector.extract_strided_slice %54 {offsets = [0, 32], sizes = [1, 32], strides = [1, 1]} : vector<1x128xf32> to vector<1x32xf32>
    %58 = vector.extract_strided_slice %55 {offsets = [0, 64], sizes = [1, 32], strides = [1, 1]} : vector<1x128xf32> to vector<1x32xf32>
    %59 = vector.extract_strided_slice %54 {offsets = [0, 96], sizes = [1, 32], strides = [1, 1]} : vector<1x128xf32> to vector<1x32xf32>
    %60 = arith.mulf %57, %43 : vector<1x32xf32>
    %61 = arith.mulf %56, %58 : vector<1x32xf32>
    %62 = arith.addf %60, %61 : vector<1x32xf32>
    %63 = math.tanh %62 : vector<1x32xf32>
    %64 = arith.mulf %59, %63 : vector<1x32xf32>
    %c2 = arith.constant 2 : index
    %c0_16 = arith.constant 0 : index
    %65 = vector.load %arg3[%c2, %c0_16] : memref<8x32xf32, #tpu.memory_space<vmem>>, vector<1x32xf32>
    tpu.vector_store %arg3[%c2, %c0_16], %64 {strides = array<i32>} : memref<8x32xf32, #tpu.memory_space<vmem>>, vector<1x32xf32>,
    %66 = vector.extract_strided_slice %6 {offsets = [3, 0], sizes = [1, 128], strides = [1, 1]} : vector<8x128xf32> to vector<1x128xf32>
    %cst_17 = arith.constant dense<0.000000e+00> : vector<1x128xf32>
    %67 = tpu.matmul %64, %1, %cst_17 {dimension_numbers = #tpu.dot_dimension_numbers<[1], [0], [0], [1], [0, 0, 1, 1], [], []>} : vector<1x32xf32>, vector<32x128xf32>, vector<1x128xf32> -> vector<1x128xf32>
    %68 = arith.addf %66, %67 : vector<1x128xf32>
    %69 = arith.negf %68 : vector<1x128xf32>
    %70 = math.exp %69 : vector<1x128xf32>
    %cst_18 = arith.constant 1.000000e+00 : f32
    %71 = vector.broadcast %cst_18 : f32 to vector<1x128xf32>
    %72 = arith.addf %71, %70 : vector<1x128xf32>
    %73 = arith.divf %71, %72 : vector<1x128xf32>
    %74 = math.tanh %68 : vector<1x128xf32>
    %75 = vector.extract_strided_slice %73 {offsets = [0, 0], sizes = [1, 32], strides = [1, 1]} : vector<1x128xf32> to vector<1x32xf32>
    %76 = vector.extract_strided_slice %73 {offsets = [0, 32], sizes = [1, 32], strides = [1, 1]} : vector<1x128xf32> to vector<1x32xf32>
    %77 = vector.extract_strided_slice %74 {offsets = [0, 64], sizes = [1, 32], strides = [1, 1]} : vector<1x128xf32> to vector<1x32xf32>
    %78 = vector.extract_strided_slice %73 {offsets = [0, 96], sizes = [1, 32], strides = [1, 1]} : vector<1x128xf32> to vector<1x32xf32>
    %79 = arith.mulf %76, %62 : vector<1x32xf32>
    %80 = arith.mulf %75, %77 : vector<1x32xf32>
    %81 = arith.addf %79, %80 : vector<1x32xf32>
    %82 = math.tanh %81 : vector<1x32xf32>
    %83 = arith.mulf %78, %82 : vector<1x32xf32>
    %c3 = arith.constant 3 : index
    %c0_19 = arith.constant 0 : index
    %84 = vector.load %arg3[%c3, %c0_19] : memref<8x32xf32, #tpu.memory_space<vmem>>, vector<1x32xf32>
    tpu.vector_store %arg3[%c3, %c0_19], %83 {strides = array<i32>} : memref<8x32xf32, #tpu.memory_space<vmem>>, vector<1x32xf32>,
    %85 = vector.extract_strided_slice %6 {offsets = [4, 0], sizes = [1, 128], strides = [1, 1]} : vector<8x128xf32> to vector<1x128xf32>
    %cst_20 = arith.constant dense<0.000000e+00> : vector<1x128xf32>
    %86 = tpu.matmul %83, %1, %cst_20 {dimension_numbers = #tpu.dot_dimension_numbers<[1], [0], [0], [1], [0, 0, 1, 1], [], []>} : vector<1x32xf32>, vector<32x128xf32>, vector<1x128xf32> -> vector<1x128xf32>
    %87 = arith.addf %85, %86 : vector<1x128xf32>
    %88 = arith.negf %87 : vector<1x128xf32>
    %89 = math.exp %88 : vector<1x128xf32>
    %cst_21 = arith.constant 1.000000e+00 : f32
    %90 = vector.broadcast %cst_21 : f32 to vector<1x128xf32>
    %91 = arith.addf %90, %89 : vector<1x128xf32>
    %92 = arith.divf %90, %91 : vector<1x128xf32>
    %93 = math.tanh %87 : vector<1x128xf32>
    %94 = vector.extract_strided_slice %92 {offsets = [0, 0], sizes = [1, 32], strides = [1, 1]} : vector<1x128xf32> to vector<1x32xf32>
    %95 = vector.extract_strided_slice %92 {offsets = [0, 32], sizes = [1, 32], strides = [1, 1]} : vector<1x128xf32> to vector<1x32xf32>
    %96 = vector.extract_strided_slice %93 {offsets = [0, 64], sizes = [1, 32], strides = [1, 1]} : vector<1x128xf32> to vector<1x32xf32>
    %97 = vector.extract_strided_slice %92 {offsets = [0, 96], sizes = [1, 32], strides = [1, 1]} : vector<1x128xf32> to vector<1x32xf32>
    %98 = arith.mulf %95, %81 : vector<1x32xf32>
    %99 = arith.mulf %94, %96 : vector<1x32xf32>
    %100 = arith.addf %98, %99 : vector<1x32xf32>
    %101 = math.tanh %100 : vector<1x32xf32>
    %102 = arith.mulf %97, %101 : vector<1x32xf32>
    %c4 = arith.constant 4 : index
    %c0_22 = arith.constant 0 : index
    %103 = vector.load %arg3[%c4, %c0_22] : memref<8x32xf32, #tpu.memory_space<vmem>>, vector<1x32xf32>
    tpu.vector_store %arg3[%c4, %c0_22], %102 {strides = array<i32>} : memref<8x32xf32, #tpu.memory_space<vmem>>, vector<1x32xf32>,
    %104 = vector.extract_strided_slice %6 {offsets = [5, 0], sizes = [1, 128], strides = [1, 1]} : vector<8x128xf32> to vector<1x128xf32>
    %cst_23 = arith.constant dense<0.000000e+00> : vector<1x128xf32>
    %105 = tpu.matmul %102, %1, %cst_23 {dimension_numbers = #tpu.dot_dimension_numbers<[1], [0], [0], [1], [0, 0, 1, 1], [], []>} : vector<1x32xf32>, vector<32x128xf32>, vector<1x128xf32> -> vector<1x128xf32>
    %106 = arith.addf %104, %105 : vector<1x128xf32>
    %107 = arith.negf %106 : vector<1x128xf32>
    %108 = math.exp %107 : vector<1x128xf32>
    %cst_24 = arith.constant 1.000000e+00 : f32
    %109 = vector.broadcast %cst_24 : f32 to vector<1x128xf32>
    %110 = arith.addf %109, %108 : vector<1x128xf32>
    %111 = arith.divf %109, %110 : vector<1x128xf32>
    %112 = math.tanh %106 : vector<1x128xf32>
    %113 = vector.extract_strided_slice %111 {offsets = [0, 0], sizes = [1, 32], strides = [1, 1]} : vector<1x128xf32> to vector<1x32xf32>
    %114 = vector.extract_strided_slice %111 {offsets = [0, 32], sizes = [1, 32], strides = [1, 1]} : vector<1x128xf32> to vector<1x32xf32>
    %115 = vector.extract_strided_slice %112 {offsets = [0, 64], sizes = [1, 32], strides = [1, 1]} : vector<1x128xf32> to vector<1x32xf32>
    %116 = vector.extract_strided_slice %111 {offsets = [0, 96], sizes = [1, 32], strides = [1, 1]} : vector<1x128xf32> to vector<1x32xf32>
    %117 = arith.mulf %114, %100 : vector<1x32xf32>
    %118 = arith.mulf %113, %115 : vector<1x32xf32>
    %119 = arith.addf %117, %118 : vector<1x32xf32>
    %120 = math.tanh %119 : vector<1x32xf32>
    %121 = arith.mulf %116, %120 : vector<1x32xf32>
    %c5 = arith.constant 5 : index
    %c0_25 = arith.constant 0 : index
    %122 = vector.load %arg3[%c5, %c0_25] : memref<8x32xf32, #tpu.memory_space<vmem>>, vector<1x32xf32>
    tpu.vector_store %arg3[%c5, %c0_25], %121 {strides = array<i32>} : memref<8x32xf32, #tpu.memory_space<vmem>>, vector<1x32xf32>,
    %123 = vector.extract_strided_slice %6 {offsets = [6, 0], sizes = [1, 128], strides = [1, 1]} : vector<8x128xf32> to vector<1x128xf32>
    %cst_26 = arith.constant dense<0.000000e+00> : vector<1x128xf32>
    %124 = tpu.matmul %121, %1, %cst_26 {dimension_numbers = #tpu.dot_dimension_numbers<[1], [0], [0], [1], [0, 0, 1, 1], [], []>} : vector<1x32xf32>, vector<32x128xf32>, vector<1x128xf32> -> vector<1x128xf32>
    %125 = arith.addf %123, %124 : vector<1x128xf32>
    %126 = arith.negf %125 : vector<1x128xf32>
    %127 = math.exp %126 : vector<1x128xf32>
    %cst_27 = arith.constant 1.000000e+00 : f32
    %128 = vector.broadcast %cst_27 : f32 to vector<1x128xf32>
    %129 = arith.addf %128, %127 : vector<1x128xf32>
    %130 = arith.divf %128, %129 : vector<1x128xf32>
    %131 = math.tanh %125 : vector<1x128xf32>
    %132 = vector.extract_strided_slice %130 {offsets = [0, 0], sizes = [1, 32], strides = [1, 1]} : vector<1x128xf32> to vector<1x32xf32>
    %133 = vector.extract_strided_slice %130 {offsets = [0, 32], sizes = [1, 32], strides = [1, 1]} : vector<1x128xf32> to vector<1x32xf32>
    %134 = vector.extract_strided_slice %131 {offsets = [0, 64], sizes = [1, 32], strides = [1, 1]} : vector<1x128xf32> to vector<1x32xf32>
    %135 = vector.extract_strided_slice %130 {offsets = [0, 96], sizes = [1, 32], strides = [1, 1]} : vector<1x128xf32> to vector<1x32xf32>
    %136 = arith.mulf %133, %119 : vector<1x32xf32>
    %137 = arith.mulf %132, %134 : vector<1x32xf32>
    %138 = arith.addf %136, %137 : vector<1x32xf32>
    %139 = math.tanh %138 : vector<1x32xf32>
    %140 = arith.mulf %135, %139 : vector<1x32xf32>
    %c6 = arith.constant 6 : index
    %c0_28 = arith.constant 0 : index
    %141 = vector.load %arg3[%c6, %c0_28] : memref<8x32xf32, #tpu.memory_space<vmem>>, vector<1x32xf32>
    tpu.vector_store %arg3[%c6, %c0_28], %140 {strides = array<i32>} : memref<8x32xf32, #tpu.memory_space<vmem>>, vector<1x32xf32>,
    %142 = vector.extract_strided_slice %6 {offsets = [7, 0], sizes = [1, 128], strides = [1, 1]} : vector<8x128xf32> to vector<1x128xf32>
    %cst_29 = arith.constant dense<0.000000e+00> : vector<1x128xf32>
    %143 = tpu.matmul %140, %1, %cst_29 {dimension_numbers = #tpu.dot_dimension_numbers<[1], [0], [0], [1], [0, 0, 1, 1], [], []>} : vector<1x32xf32>, vector<32x128xf32>, vector<1x128xf32> -> vector<1x128xf32>
    %144 = arith.addf %142, %143 : vector<1x128xf32>
    %145 = arith.negf %144 : vector<1x128xf32>
    %146 = math.exp %145 : vector<1x128xf32>
    %cst_30 = arith.constant 1.000000e+00 : f32
    %147 = vector.broadcast %cst_30 : f32 to vector<1x128xf32>
    %148 = arith.addf %147, %146 : vector<1x128xf32>
    %149 = arith.divf %147, %148 : vector<1x128xf32>
    %150 = math.tanh %144 : vector<1x128xf32>
    %151 = vector.extract_strided_slice %149 {offsets = [0, 0], sizes = [1, 32], strides = [1, 1]} : vector<1x128xf32> to vector<1x32xf32>
    %152 = vector.extract_strided_slice %149 {offsets = [0, 32], sizes = [1, 32], strides = [1, 1]} : vector<1x128xf32> to vector<1x32xf32>
    %153 = vector.extract_strided_slice %150 {offsets = [0, 64], sizes = [1, 32], strides = [1, 1]} : vector<1x128xf32> to vector<1x32xf32>
    %154 = vector.extract_strided_slice %149 {offsets = [0, 96], sizes = [1, 32], strides = [1, 1]} : vector<1x128xf32> to vector<1x32xf32>
    %155 = arith.mulf %152, %138 : vector<1x32xf32>
    %156 = arith.mulf %151, %153 : vector<1x32xf32>
    %157 = arith.addf %155, %156 : vector<1x32xf32>
    %158 = math.tanh %157 : vector<1x32xf32>
    %159 = arith.mulf %154, %158 : vector<1x32xf32>
    %c7 = arith.constant 7 : index
    %c0_31 = arith.constant 0 : index
    %160 = vector.load %arg3[%c7, %c0_31] : memref<8x32xf32, #tpu.memory_space<vmem>>, vector<1x32xf32>
    tpu.vector_store %arg3[%c7, %c0_31], %159 {strides = array<i32>} : memref<8x32xf32, #tpu.memory_space<vmem>>, vector<1x32xf32>,
    %c56 = arith.constant 56 : index
    %c0_32 = arith.constant 0 : index
    %161 = vector.load %arg1[%c56, %c0_32] : memref<96x128xf32, #tpu.memory_space<vmem>>, vector<32x128xf32>
    %c88 = arith.constant 88 : index
    %c0_33 = arith.constant 0 : index
    %162 = vector.load %arg1[%c88, %c0_33] : memref<96x128xf32, #tpu.memory_space<vmem>>, vector<1x128xf32>
    %c0_34 = arith.constant 0 : index
    %c0_35 = arith.constant 0 : index
    %163 = vector.load %arg3[%c0_34, %c0_35] : memref<8x32xf32, #tpu.memory_space<vmem>>, vector<8x32xf32>
    %cst_36 = arith.constant dense<0.000000e+00> : vector<8x128xf32>
    %164 = tpu.matmul %163, %161, %cst_36 {dimension_numbers = #tpu.dot_dimension_numbers<[1], [0], [0], [1], [0, 0, 1, 1], [], []>} : vector<8x32xf32>, vector<32x128xf32>, vector<8x128xf32> -> vector<8x128xf32>
    %165 = vector.broadcast %162 : vector<1x128xf32> to vector<8x128xf32>
    %166 = arith.addf %164, %165 : vector<8x128xf32>
    %c0_37 = arith.constant 0 : index
    %c0_38 = arith.constant 0 : index
    %167 = vector.load %arg2[%c0_37, %c0_38] : memref<8x128xf32, #tpu.memory_space<vmem>>, vector<8x128xf32>
    tpu.vector_store %arg2[%c0_37, %c0_38], %166 {strides = array<i32>} : memref<8x128xf32, #tpu.memory_space<vmem>>, vector<8x128xf32>,
    return
  }
}

</mosaic_0001>

<bundles_post_ra>
// kernel: _lambda_.1
= control target key start
LH: loop header
LB: loop body
LE: loop exit
PB: predicated region body
PF: predicated region fallthrough
CT: control target
= control target key end

     0   :  { %7 = vsyncpa [#allocation4], 0  ;;  %s1686_s0 = inlined_call_operand.hbm [shape: f32[8,16], index: 0, kind: input, shape index: {}]   ;;  %s1687_s1 = inlined_call_operand.hbm [shape: f32[96,128], index: 1, kind: input, shape index: {}]   ;;  %s1688_s2 = inlined_call_operand.hbm [shape: f32[8,128], index: 2, kind: output, shape index: {}]  }
   0x1   :  { %8 = vsyncpa [#allocation7], 0 }
   0x2   :  { %9 = vsyncpa [#allocation5], 0  ;;  %s1486_s9 = smov [#allocation3]   ;;  %s1487_s11 = smov [#allocation6]  }
   0x3   :  { %s16_s10 = sshll.u32 %s1486_s9, 4  ;;  %s25_s12 = sshll.u32 %s1487_s11, 4  ;;  %s17_s10 = int_to_ptr.vmem [resolvable:$true] %s16_s10  ;;  %s1511_s12 = int_to_ptr.vmem [resolvable:$true] %s25_s12 }
   0x4   :  { %s1414_s15 = scalar_lea.hbm %s1686_s0, 128 }
   0x5   :  { %p1415_p0 = scmp.ne.s32.totalorder %s1686_s0, %s1414_s15  ;;  %p1418_p1 = scmp.lt.u32.totalorder %s1414_s15, %s1686_s0 }
   0x7   :  { %p1420_p2 = pnand %p1418_p1, %p1415_p0 }
   0x9   :  { %1423 = shalt.err (!%p1420_p2)
}
   0xa   :  { %s1424_s20 = scalar_lea.vmem %s17_s10, 128  ;;  %p1429_p4 = scmp.lt.s32.totalorder %s17_s10, %s17_s10 }
   0xb   :  { %p1425_p3 = scmp.ne.s32.totalorder %s17_s10, %s1424_s20  ;;  %p1430_p5 = scmp.lt.s32.totalorder %s1424_s20, %s1424_s20 }
   0xd   :  { %p1431_p6 = por %p1430_p5, %p1429_p4 }
   0xf   :  { %p1432_p7 = pnand %p1431_p6, %p1425_p3 }
  0x11   :  { %1435 = shalt.err (!%p1432_p7)
}
  0x12   :  { %19 = dma.hbm_to_vmem [thread:$0]  %s1686_s0, 128, %s17_s10, [#allocation4]  }
  0x13   :  { %s1436_s25 = scalar_lea.hbm %s1687_s1, 1536 }
  0x14   :  { %p1437_p8 = scmp.ne.s32.totalorder %s1687_s1, %s1436_s25  ;;  %p1440_p9 = scmp.lt.u32.totalorder %s1436_s25, %s1687_s1 }
  0x16   :  { %p1442_p10 = pnand %p1440_p9, %p1437_p8 }
  0x18   :  { %1445 = shalt.err (!%p1442_p10)
}
  0x19   :  { %s1446_s30 = scalar_lea.vmem %s1511_s12, 1536  ;;  %p1451_p12 = scmp.lt.s32.totalorder %s1511_s12, %s1511_s12 }
  0x1a   :  { %p1447_p11 = scmp.ne.s32.totalorder %s1511_s12, %s1446_s30  ;;  %p1452_p13 = scmp.lt.s32.totalorder %s1446_s30, %s1446_s30 }
  0x1c   :  { %p1453_p0 = por %p1452_p13, %p1451_p12 }
  0x1e   :  { %p1454_p1 = pnand %p1453_p0, %p1447_p11 }
  0x20   :  { %1457 = shalt.err (!%p1454_p1)
}
  0x21   :  { %s1488_s0 = smov 128   ;;  %s1489_s3 = smov 8  }
  0x22   :  { %31 = dma.hbm_to_vmem [thread:$0]  %s1687_s1, 1536, %s1511_s12, [#allocation7], %s1488_s0, %s1488_s0, %s1489_s3  }
  0x23   :  { %1480 = dma.done.wait [#allocation4], 128  }
  0x24   :  { %1481 = vsyncadd [#allocation4], 4294967168 }
  0x25   :  { %1482 = dma.done.wait [#allocation7], 1536  }
  0x26   :  { %1483 = vsyncadd [#allocation7], 4294965760  ;;  %v1490_v0 = vmov 0.0|0.0   ;;  %vm1491_vm0 = vmmov 0   ;;  %v1492_v1 = vmov 0.0   ;;  %v40_v2 = vld [vmem:[#allocation6 + $0x10] sm:$0xff] }
  0x27   :  { %1286 = vmatprep.subr.bf16.mxu1 %v1490_v0  ;;  %1283 = vmatprep.subr.bf16.mxu0 %v1490_v0  ;;  %v41_v3 = vld [vmem:[#allocation6 + $0x18] sm:$0xff]  ;;  %v38_v4 = vld [vmem:[#allocation6] sm:$0xff]  ;;  %v39_v6 = vld [vmem:[#allocation6 + $0x8] sm:$0xff]  ;;  %vm50_vm1 = vcmask 130048   ;;  %s1493_s1 = smov 64   ;;  %s1494_s6 = smov 32  }
  0x28   :  { %1181 = vmatprep.mubr.msk.f32.mxu0 %vm1491_vm0, %v1492_v1  ;;  %1192 = vmatprep.mubr.msk.f32.mxu1 %vm1491_vm0, %v1492_v1  ;;  %v1548_v5 = vpack.c.bf16 %v41_v3, %v40_v2  ;;  %v42_v7 = vld [vmem:[#allocation6 + $0x20] sm:$0xff]  ;;  %v1284_v8 = vpack.c.bf16 %v39_v6, %v38_v4  ;;  %v43_v9 = vld [vmem:[#allocation6 + $0x28] sm:$0xff]  ;;  %v45_v11 = vld [vmem:[#allocation3] sm:$0xff]  ;;  %vm227_vm2 = vcmask 253952   ;;  %vm124_vm3 = vcmask 261120   ;;  %s1495_s7 = smov [#allocation8]  }
  0x29   :  { %v1551_v10 = vpack.c.bf16 %v43_v9, %v42_v7  ;;  %v1110_v12 = vld [vmem:[#allocation6 + $0x30] ss:$0 sm:$0xff]  ;;  %vm336_vm4 = vcmask 254977   ;;  %vm560_vm5 = vcmask 257027   ;;  %vm784_vm6 = vcmask 259077   ;;  %s1100_s8 = sshll.u32 %s1495_s7, 4  ;;  %s1101_s8 = int_to_ptr.vmem [resolvable:$true] %s1100_s8 }
  0x2a   :  { %1288 = vmatpush3.bf16.msra.mxu1 %v1548_v5  ;;  %1285 = vmatpush3.bf16.msra.mxu0 %v1284_v8  ;;  %vm448_vm7 = vcmask 256002   ;;  %vm672_vm8 = vcmask 258052   ;;  %vm896_vm9 = vcmask 260102   ;;  %vm1008_vm10 = vcmask 261127   ;;  %s1458_s9 = scalar_lea.vmem %s1101_s8, 128  ;;  %p1463_p3 = scmp.lt.s32.totalorder %s1101_s8, %s1101_s8 }
  0x2b   :  { %1289 = vmatprep.subr.bf16.mxu1 %v1490_v0  ;;  %1292 = vmatprep.subr.bf16.mxu0 %v1490_v0  ;;  %p1459_p2 = scmp.ne.s32.totalorder %s1101_s8, %s1458_s9  ;;  %p1464_p4 = scmp.lt.s32.totalorder %s1458_s9, %s1458_s9 }
  0x2d   :  { %1182 = vmatmul.mubr.msk.f32.vlgmr.msra.gmra.mrb[0].mxu0 %vm50_vm1, %v45_v11  ;;  %p1465_p5 = por %p1464_p4, %p1463_p3 }
  0x2e   :  { %1291 = vmatpush3.bf16.msra.mxu1 %v1551_v10  ;;  %1294 = vmatpush3.bf16.msra.mxu0 %v1548_v5 }
  0x2f   :  { %1203 = vmatprep.mubr.msk.f32.mxu0 %vm1491_vm0, %v1492_v1  ;;  %1295 = vmatprep.subr.bf16.mxu0 %v1490_v0  ;;  %p1466_p6 = pnand %p1465_p5, %p1459_p2 }
  0x30   :  { %1298 = vmatprep.subr.bf16.mxu1 %v1490_v0 }
  0x31   :  { %1193 = vmatmul.mubr.f32.vlgmr.msra.gmra.mrb[0].mxu1 %v1492_v1 }
  0x32   :  { %1300 = vmatpush3.bf16.msra.mxu1 %v1548_v5  ;;  %1214 = vmatprep.mubr.msk.f32.mxu1 %vm1491_vm0, %v1492_v1 }
  0x33   :  { %1297 = vmatpush3.bf16.msra.mxu0 %v1551_v10  ;;  %1301 = vmatprep.subr.bf16.mxu1 %v1490_v0 }
  0x34   :  { %1304 = vmatprep.subr.bf16.mxu0 %v1490_v0 }
  0x36   :  { %1303 = vmatpush3.bf16.msra.mxu1 %v1551_v10 }
  0x37   :  { %1310 = vmatprep.subr.bf16.mxu1 %v1490_v0 }
 0x100   :  { %v120_v13 = vpop.f32.mrb[0].mxu0 }
 0x101   :  { %v1570_v14 = vadd.f32 %v1110_v12, %v120_v13  ;;  %v1183_v15 = vpop.f32.mrb[1].mxu0 }
 0x104   :  { %v194_v16 = vpop.f32.mrb[0].mxu1 }
 0x105   :  { %v198_v17 = vadd.f32 %v194_v16, %v1570_v14  ;;  %v1194_v18 = vpop.f32.mrb[1].mxu1 }
 0x107   :  { %1350 = vtanh.f32 %v198_v17  ;;  %v1112_v20 = vmul.f32 -1.442695, %v198_v17 }
 0x109   :  { %1352 = vpow2.f32 %v1112_v20 }
 0x111   :  { %v1351_v19 = vpop.eup %1350 }
 0x112   :  { %208 = vrot.lane.b32.xlu0 %v1351_v19, %s1493_s1 }
 0x113   :  { %v1353_v21 = vpop.eup %1352 }
 0x114   :  { %v202_v22 = vadd.f32 1.0, %v1353_v21 }
 0x116   :  { %1354 = vrcp.f32 %v202_v22 }
 0x120   :  { %v1355_v23 = vpop.eup %1354 }
 0x121   :  { %v206_v26 = vmul.f32 0.0, %v1355_v23 }
 0x184   :  { %v209_v24 = vpop.permute.xlu0 %208 }
 0x185   :  { %v211_v25 = vmul.f32 %v1355_v23, %v209_v24 }
 0x187   :  { %213 = vrot.lane.b32.xlu0 %v211_v25, %s1494_s6 }
 0x1f9   :  { %v214_v27 = vpop.permute.xlu0 %213 }
 0x1fa   :  { %v216_v28 = vadd.f32 %v214_v27, %v206_v26 }
 0x1fc   :  { %1356 = vtanh.f32 %v216_v28  ;;  %v313_v44 = vrot.slane %v216_v28, 7 }
 0x206   :  { %v1357_v29 = vpop.eup %1356 }
 0x207   :  { %219 = vrot.lane.b32.xlu1 %v1357_v29, %s1493_s1 }
 0x279   :  { %v220_v30 = vpop.permute.xlu1 %219 }
 0x27a   :  { %v222_v31 = vmul.f32 %v1355_v23, %v220_v30 }
 0x27c   :  { %224 = vrot.lane.b32.xlu1 %v222_v31, %s1494_s6 }
 0x2ee   :  { %v225_v32 = vpop.permute.xlu1 %224 }
 0x2ef   :  { %228 = vst.msk [vmem:[#allocation2] sm:$0x1] %vm227_vm2, %v225_v32  ;;  %1204 = vmatmul.mubr.msk.f32.vlgmr.msra.gmra.mrb[2].mxu0 %vm124_vm3, %v225_v32 }
 0x2f0   :  { %1306 = vmatpush3.bf16.msra.mxu0 %v1548_v5  ;;  %1225 = vmatprep.mubr.msk.f32.mxu0 %vm1491_vm0, %v1492_v1 }
 0x2f1   :  { %1307 = vmatprep.subr.bf16.mxu0 %v1490_v0 }
 0x2f4   :  { %1309 = vmatpush3.bf16.msra.mxu0 %v1551_v10 }
 0x2f5   :  { %1316 = vmatprep.subr.bf16.mxu0 %v1490_v0 }
 0x3c2   :  { %v297_v33 = vpop.f32.mrb[2].mxu0 }
 0x3c3   :  { %v302_v34 = vrot.slane %v297_v33, 7  ;;  %v1205_v35 = vpop.f32.mrb[3].mxu0 }
 0x3c5   :  { %v304_v36 = vadd.f32 %v302_v34, %v1570_v14 }
 0x3c7   :  { %1358 = vtanh.f32 %v304_v36  ;;  %v1114_v38 = vmul.f32 -1.442695, %v304_v36 }
 0x3c9   :  { %1360 = vpow2.f32 %v1114_v38 }
 0x3d1   :  { %v1359_v37 = vpop.eup %1358 }
 0x3d2   :  { %317 = vrot.lane.b32.xlu0 %v1359_v37, %s1493_s1 }
 0x3d3   :  { %v1361_v39 = vpop.eup %1360 }
 0x3d4   :  { %v308_v40 = vadd.f32 1.0, %v1361_v39 }
 0x3d6   :  { %1362 = vrcp.f32 %v308_v40 }
 0x3e0   :  { %v1363_v41 = vpop.eup %1362 }
 0x3e1   :  { %v315_v45 = vmul.f32 %v1363_v41, %v313_v44 }
 0x444   :  { %v318_v42 = vpop.permute.xlu0 %317 }
 0x445   :  { %v320_v43 = vmul.f32 %v1363_v41, %v318_v42 }
 0x447   :  { %322 = vrot.lane.b32.xlu1 %v320_v43, %s1494_s6 }
 0x4b9   :  { %v323_v46 = vpop.permute.xlu1 %322 }
 0x4ba   :  { %v325_v47 = vadd.f32 %v323_v46, %v315_v45 }
 0x4bc   :  { %1364 = vtanh.f32 %v325_v47  ;;  %v425_v2 = vrot.slane %v325_v47, 7 }
 0x4c6   :  { %v1365_v48 = vpop.eup %1364 }
 0x4c7   :  { %328 = vrot.lane.b32.xlu0 %v1365_v48, %s1493_s1 }
 0x539   :  { %v329_v49 = vpop.permute.xlu0 %328 }
 0x53a   :  { %v1588_v50 = vmul.f32 %v1363_v41, %v329_v49 }
 0x53c   :  { %v338_v51 = vrot.slane %v1588_v50, 1 }
 0x53e   :  { %339 = vrot.lane.b32.xlu1 %v338_v51, %s1494_s6 }
 0x5b0   :  { %v340_v52 = vpop.permute.xlu1 %339 }
 0x5b1   :  { %1215 = vmatmul.mubr.msk.f32.vlgmr.msra.gmra.mrb[2].mxu1 %vm124_vm3, %v340_v52 }
 0x5b2   :  { %1312 = vmatpush3.bf16.msra.mxu1 %v1548_v5  ;;  %1236 = vmatprep.mubr.msk.f32.mxu1 %vm1491_vm0, %v1492_v1 }
 0x5b3   :  { %1313 = vmatprep.subr.bf16.mxu1 %v1490_v0 }
 0x5b6   :  { %1315 = vmatpush3.bf16.msra.mxu1 %v1551_v10 }
 0x5b7   :  { %1322 = vmatprep.subr.bf16.mxu1 %v1490_v0 }
 0x684   :  { %v409_v53 = vpop.f32.mrb[2].mxu1 }
 0x685   :  { %v414_v54 = vrot.slane %v409_v53, 6  ;;  %v1216_v55 = vpop.f32.mrb[3].mxu1 }
 0x687   :  { %v416_v56 = vadd.f32 %v414_v54, %v1570_v14 }
 0x689   :  { %1366 = vtanh.f32 %v416_v56  ;;  %v1116_v58 = vmul.f32 -1.442695, %v416_v56 }
 0x68b   :  { %1368 = vpow2.f32 %v1116_v58 }
 0x693   :  { %v1367_v57 = vpop.eup %1366 }
 0x694   :  { %429 = vrot.lane.b32.xlu0 %v1367_v57, %s1493_s1 }
 0x695   :  { %v1369_v59 = vpop.eup %1368 }
 0x696   :  { %v420_v60 = vadd.f32 1.0, %v1369_v59 }
 0x698   :  { %1370 = vrcp.f32 %v420_v60 }
 0x6a2   :  { %v1371_v61 = vpop.eup %1370 }
 0x6a3   :  { %v427_v3 = vmul.f32 %v1371_v61, %v425_v2 }
 0x706   :  { %v430_v62 = vpop.permute.xlu0 %429 }
 0x707   :  { %v432_v63 = vmul.f32 %v1371_v61, %v430_v62 }
 0x709   :  { %434 = vrot.lane.b32.xlu1 %v432_v63, %s1494_s6 }
 0x77b   :  { %v435_v4 = vpop.permute.xlu1 %434 }
 0x77c   :  { %v437_v6 = vadd.f32 %v435_v4, %v427_v3 }
 0x77e   :  { %1372 = vtanh.f32 %v437_v6  ;;  %v537_v25 = vrot.slane %v437_v6, 7 }
 0x788   :  { %v1373_v7 = vpop.eup %1372 }
 0x789   :  { %440 = vrot.lane.b32.xlu0 %v1373_v7, %s1493_s1 }
 0x7fb   :  { %v441_v8 = vpop.permute.xlu0 %440 }
 0x7fc   :  { %v1603_v9 = vmul.f32 %v1371_v61, %v441_v8 }
 0x7fe   :  { %v450_v11 = vrot.slane %v1603_v9, 2 }
 0x800   :  { %451 = vrot.lane.b32.xlu1 %v450_v11, %s1494_s6 }
 0x872   :  { %v452_v12 = vpop.permute.xlu1 %451 }
 0x873   :  { %1226 = vmatmul.mubr.msk.f32.vlgmr.msra.gmra.mrb[4].mxu0 %vm124_vm3, %v452_v12 }
 0x874   :  { %1318 = vmatpush3.bf16.msra.mxu0 %v1548_v5  ;;  %1247 = vmatprep.mubr.msk.f32.mxu0 %vm1491_vm0, %v1492_v1 }
 0x875   :  { %1319 = vmatprep.subr.bf16.mxu0 %v1490_v0 }
 0x878   :  { %1321 = vmatpush3.bf16.msra.mxu0 %v1551_v10 }
 0x879   :  { %1328 = vmatprep.subr.bf16.mxu0 %v1490_v0 }
 0x946   :  { %v521_v13 = vpop.f32.mrb[4].mxu0 }
 0x947   :  { %v526_v15 = vrot.slane %v521_v13, 5  ;;  %v1227_v16 = vpop.f32.mrb[5].mxu0 }
 0x949   :  { %v528_v17 = vadd.f32 %v526_v15, %v1570_v14 }
 0x94b   :  { %1374 = vtanh.f32 %v528_v17  ;;  %v1118_v19 = vmul.f32 -1.442695, %v528_v17 }
 0x94d   :  { %1376 = vpow2.f32 %v1118_v19 }
 0x955   :  { %v1375_v18 = vpop.eup %1374 }
 0x956   :  { %541 = vrot.lane.b32.xlu0 %v1375_v18, %s1493_s1 }
 0x957   :  { %v1377_v20 = vpop.eup %1376 }
 0x958   :  { %v532_v21 = vadd.f32 1.0, %v1377_v20 }
 0x95a   :  { %1378 = vrcp.f32 %v532_v21 }
 0x964   :  { %v1379_v22 = vpop.eup %1378 }
 0x965   :  { %v539_v26 = vmul.f32 %v1379_v22, %v537_v25 }
 0x9c8   :  { %v542_v23 = vpop.permute.xlu0 %541 }
 0x9c9   :  { %v544_v24 = vmul.f32 %v1379_v22, %v542_v23 }
 0x9cb   :  { %546 = vrot.lane.b32.xlu1 %v544_v24, %s1494_s6 }
 0xa3d   :  { %v547_v27 = vpop.permute.xlu1 %546 }
 0xa3e   :  { %v549_v28 = vadd.f32 %v547_v27, %v539_v26 }
 0xa40   :  { %1380 = vtanh.f32 %v549_v28  ;;  %v649_v45 = vrot.slane %v549_v28, 7 }
 0xa4a   :  { %v1381_v29 = vpop.eup %1380 }
 0xa4b   :  { %552 = vrot.lane.b32.xlu0 %v1381_v29, %s1493_s1 }
 0xabd   :  { %v553_v30 = vpop.permute.xlu0 %552 }
 0xabe   :  { %v1618_v31 = vmul.f32 %v1379_v22, %v553_v30 }
 0xac0   :  { %v562_v32 = vrot.slane %v1618_v31, 3 }
 0xac2   :  { %563 = vrot.lane.b32.xlu1 %v562_v32, %s1494_s6 }
 0xb34   :  { %v564_v33 = vpop.permute.xlu1 %563 }
 0xb35   :  { %1237 = vmatmul.mubr.msk.f32.vlgmr.msra.gmra.mrb[4].mxu1 %vm124_vm3, %v564_v33 }
 0xb36   :  { %1324 = vmatpush3.bf16.msra.mxu1 %v1548_v5  ;;  %1258 = vmatprep.mubr.msk.f32.mxu1 %vm1491_vm0, %v1492_v1 }
 0xb37   :  { %1325 = vmatprep.subr.bf16.mxu1 %v1490_v0 }
 0xb3a   :  { %1327 = vmatpush3.bf16.msra.mxu1 %v1551_v10 }
 0xb3b   :  { %1334 = vmatprep.subr.bf16.mxu1 %v1490_v0 }
 0xc08   :  { %v633_v34 = vpop.f32.mrb[4].mxu1 }
 0xc09   :  { %v638_v35 = vrot.slane %v633_v34, 4  ;;  %v1238_v36 = vpop.f32.mrb[5].mxu1 }
 0xc0b   :  { %v640_v37 = vadd.f32 %v638_v35, %v1570_v14 }
 0xc0d   :  { %1382 = vtanh.f32 %v640_v37  ;;  %v1120_v39 = vmul.f32 -1.442695, %v640_v37 }
 0xc0f   :  { %1384 = vpow2.f32 %v1120_v39 }
 0xc17   :  { %v1383_v38 = vpop.eup %1382 }
 0xc18   :  { %653 = vrot.lane.b32.xlu0 %v1383_v38, %s1493_s1 }
 0xc19   :  { %v1385_v40 = vpop.eup %1384 }
 0xc1a   :  { %v644_v41 = vadd.f32 1.0, %v1385_v40 }
 0xc1c   :  { %1386 = vrcp.f32 %v644_v41 }
 0xc26   :  { %v1387_v42 = vpop.eup %1386 }
 0xc27   :  { %v651_v46 = vmul.f32 %v1387_v42, %v649_v45 }
 0xc8a   :  { %v654_v43 = vpop.permute.xlu0 %653 }
 0xc8b   :  { %v656_v44 = vmul.f32 %v1387_v42, %v654_v43 }
 0xc8d   :  { %658 = vrot.lane.b32.xlu1 %v656_v44, %s1494_s6 }
 0xcff   :  { %v659_v47 = vpop.permute.xlu1 %658 }
 0xd00   :  { %v661_v48 = vadd.f32 %v659_v47, %v651_v46 }
 0xd02   :  { %1388 = vtanh.f32 %v661_v48 }
 0xd0c   :  { %v1389_v49 = vpop.eup %1388 }
 0xd0d   :  { %664 = vrot.lane.b32.xlu0 %v1389_v49, %s1493_s1 }
 0xd7f   :  { %v665_v51 = vpop.permute.xlu0 %664 }
 0xd80   :  { %v1633_v52 = vmul.f32 %v1387_v42, %v665_v51 }
 0xd82   :  { %v674_v53 = vrot.slane %v1633_v52, 4 }
 0xd84   :  { %675 = vrot.lane.b32.xlu1 %v674_v53, %s1494_s6 }
 0xdf6   :  { %v676_v54 = vpop.permute.xlu1 %675 }
 0xdf7   :  { %1248 = vmatmul.mubr.msk.f32.vlgmr.msra.gmra.mrb[6].mxu0 %vm124_vm3, %v676_v54 }
 0xdf8   :  { %1330 = vmatpush3.bf16.msra.mxu0 %v1548_v5  ;;  %1269 = vmatprep.mubr.msk.f32.mxu0 %vm1491_vm0, %v1492_v1 }
 0xdf9   :  { %1331 = vmatprep.subr.bf16.mxu0 %v1490_v0 }
 0xdfc   :  { %1333 = vmatpush3.bf16.msra.mxu0 %v1551_v10  ;;  %v761_v10 = vrot.slane %v661_v48, 7 }
 0xeca   :  { %v745_v55 = vpop.f32.mrb[6].mxu0 }
 0xecb   :  { %v750_v56 = vrot.slane %v745_v55, 3  ;;  %v1249_v57 = vpop.f32.mrb[7].mxu0 }
 0xecc   :  { %v1013_v57 = vld [vmem:[#allocation6 + $0x50] sm:$0xff] }
 0xecd   :  { %v752_v58 = vadd.f32 %v750_v56, %v1570_v14  ;;  %v1012_v56 = vld [vmem:[#allocation6 + $0x48] sm:$0xff] }
 0xecf   :  { %1390 = vtanh.f32 %v752_v58  ;;  %v1122_v60 = vmul.f32 -1.442695, %v752_v58  ;;  %v1338_v58 = vpack.c.bf16 %v1013_v57, %v1012_v56 }
 0xed1   :  { %1392 = vpow2.f32 %v1122_v60 }
 0xed9   :  { %v1391_v59 = vpop.eup %1390 }
 0xeda   :  { %765 = vrot.lane.b32.xlu0 %v1391_v59, %s1493_s1 }
 0xedb   :  { %v1393_v61 = vpop.eup %1392 }
 0xedc   :  { %v756_v5 = vadd.f32 1.0, %v1393_v61 }
 0xede   :  { %1394 = vrcp.f32 %v756_v5 }
 0xee8   :  { %v1395_v62 = vpop.eup %1394 }
 0xee9   :  { %v763_v3 = vmul.f32 %v1395_v62, %v761_v10 }
 0xf4c   :  { %v766_v63 = vpop.permute.xlu0 %765 }
 0xf4d   :  { %v768_v2 = vmul.f32 %v1395_v62, %v766_v63 }
 0xf4f   :  { %770 = vrot.lane.b32.xlu1 %v768_v2, %s1494_s6 }
 0xfc1   :  { %v771_v4 = vpop.permute.xlu1 %770 }
 0xfc2   :  { %v773_v6 = vadd.f32 %v771_v4, %v763_v3 }
 0xfc4   :  { %1396 = vtanh.f32 %v773_v6 }
 0xfce   :  { %v1397_v7 = vpop.eup %1396 }
 0xfcf   :  { %776 = vrot.lane.b32.xlu0 %v1397_v7, %s1493_s1 }
0x1041   :  { %v777_v8 = vpop.permute.xlu0 %776 }
0x1042   :  { %v779_v11 = vmul.f32 %v1395_v62, %v777_v8 }
0x1044   :  { %v786_v12 = vrot.slane %v779_v11, 5 }
0x1046   :  { %787 = vrot.lane.b32.xlu1 %v786_v12, %s1494_s6 }
0x10b8   :  { %v788_v13 = vpop.permute.xlu1 %787 }
0x10b9   :  { %1259 = vmatmul.mubr.msk.f32.vlgmr.msra.gmra.mrb[6].mxu1 %vm124_vm3, %v788_v13 }
0x10ba   :  { %1280 = vmatprep.mubr.msk.f32.mxu1 %vm1491_vm0, %v1492_v1  ;;  %v873_v1 = vrot.slane %v773_v6, 7 }
0x118c   :  { %v857_v15 = vpop.f32.mrb[6].mxu1 }
0x118d   :  { %v862_v16 = vrot.slane %v857_v15, 2  ;;  %v1260_v17 = vpop.f32.mrb[7].mxu1 }
0x118f   :  { %v864_v18 = vadd.f32 %v862_v16, %v1570_v14 }
0x1191   :  { %1398 = vtanh.f32 %v864_v18  ;;  %v1124_v20 = vmul.f32 -1.442695, %v864_v18 }
0x1193   :  { %1400 = vpow2.f32 %v1124_v20 }
0x119b   :  { %v1399_v19 = vpop.eup %1398 }
0x119c   :  { %877 = vrot.lane.b32.xlu0 %v1399_v19, %s1493_s1 }
0x119d   :  { %v1401_v21 = vpop.eup %1400 }
0x119e   :  { %v868_v22 = vadd.f32 1.0, %v1401_v21 }
0x11a0   :  { %1402 = vrcp.f32 %v868_v22 }
0x11aa   :  { %v1403_v23 = vpop.eup %1402 }
0x11ab   :  { %v875_v26 = vmul.f32 %v1403_v23, %v873_v1 }
0x120e   :  { %v878_v24 = vpop.permute.xlu0 %877 }
0x120f   :  { %v880_v25 = vmul.f32 %v1403_v23, %v878_v24 }
0x1211   :  { %882 = vrot.lane.b32.xlu1 %v880_v25, %s1494_s6 }
0x1283   :  { %v883_v27 = vpop.permute.xlu1 %882 }
0x1284   :  { %v885_v28 = vadd.f32 %v883_v27, %v875_v26 }
0x1286   :  { %1404 = vtanh.f32 %v885_v28 }
0x1290   :  { %v1405_v29 = vpop.eup %1404 }
0x1291   :  { %888 = vrot.lane.b32.xlu0 %v1405_v29, %s1493_s1 }
0x1303   :  { %v889_v30 = vpop.permute.xlu0 %888 }
0x1304   :  { %v891_v32 = vmul.f32 %v1403_v23, %v889_v30 }
0x1306   :  { %v898_v33 = vrot.slane %v891_v32, 6 }
0x1308   :  { %899 = vrot.lane.b32.xlu1 %v898_v33, %s1494_s6 }
0x137a   :  { %v900_v34 = vpop.permute.xlu1 %899 }
0x137b   :  { %1270 = vmatmul.mubr.msk.f32.vlgmr.msra.gmra.mrb[8].mxu0 %vm124_vm3, %v900_v34 }
0x144e   :  { %v969_v35 = vpop.f32.mrb[8].mxu0 }
0x144f   :  { %v974_v36 = vrot.slane %v969_v35, 1  ;;  %v1271_v37 = vpop.f32.mrb[9].mxu0 }
0x1451   :  { %v976_v38 = vadd.f32 %v974_v36, %v1570_v14  ;;  %v985_v14 = vrot.slane %v885_v28, 7 }
0x1453   :  { %1406 = vtanh.f32 %v976_v38  ;;  %v1126_v40 = vmul.f32 -1.442695, %v976_v38 }
0x1455   :  { %1408 = vpow2.f32 %v1126_v40 }
0x145d   :  { %v1407_v39 = vpop.eup %1406 }
0x145e   :  { %989 = vrot.lane.b32.xlu0 %v1407_v39, %s1493_s1 }
0x145f   :  { %v1409_v41 = vpop.eup %1408 }
0x1460   :  { %v980_v42 = vadd.f32 1.0, %v1409_v41 }
0x1462   :  { %1410 = vrcp.f32 %v980_v42 }
0x146c   :  { %v1411_v43 = vpop.eup %1410 }
0x146d   :  { %v987_v46 = vmul.f32 %v1411_v43, %v985_v14 }
0x14d0   :  { %v990_v44 = vpop.permute.xlu0 %989 }
0x14d1   :  { %v992_v45 = vmul.f32 %v1411_v43, %v990_v44 }
0x14d3   :  { %994 = vrot.lane.b32.xlu1 %v992_v45, %s1494_s6 }
0x14d7   :  { %333 = vrot.lane.b32.xlu1 %v1588_v50, %s1494_s6  ;;  %v1010_v50 = vld [vmem:[#allocation6 + $0x38] sm:$0xff] }
0x14db   :  { %557 = vrot.lane.b32.xlu1 %v1618_v31, %s1494_s6  ;;  %v1011_v31 = vld [vmem:[#allocation6 + $0x40] sm:$0xff] }
0x14dc   :  { %v1335_v55 = vpack.c.bf16 %v1011_v31, %v1010_v50 }
0x14de   :  { %1336 = vmatpush3.bf16.msra.mxu1 %v1335_v55 }
0x14df   :  { %781 = vrot.lane.b32.xlu1 %v779_v11, %s1494_s6  ;;  %1337 = vmatprep.subr.bf16.mxu1 %v1490_v0  ;;  %v1127_v0 = vld [vmem:[#allocation6 + $0x58] ss:$0 sm:$0xff] }
0x14e2   :  { %1339 = vmatpush3.bf16.msra.mxu1 %v1338_v58 }
0x1545   :  { %v995_v47 = vpop.permute.xlu1 %994 }
0x1546   :  { %v997_v48 = vadd.f32 %v995_v47, %v987_v46 }
0x1548   :  { %1412 = vtanh.f32 %v997_v48 }
0x1549   :  { %v334_v49 = vpop.permute.xlu1 %333 }
0x154a   :  { %337 = vst.msk [vmem:[#allocation2] sm:$0x2] %vm336_vm4, %v334_v49 }
0x154d   :  { %v558_v51 = vpop.permute.xlu1 %557 }
0x154e   :  { %561 = vst.msk [vmem:[#allocation2] sm:$0x8] %vm560_vm5, %v558_v51 }
0x1551   :  { %v782_v53 = vpop.permute.xlu1 %781 }
0x1552   :  { %v1413_v54 = vpop.eup %1412  ;;  %785 = vst.msk [vmem:[#allocation2] sm:$0x20] %vm784_vm6, %v782_v53 }
0x1553   :  { %1000 = vrot.lane.b32.xlu0 %v1413_v54, %s1493_s1 }
0x1557   :  { %445 = vrot.lane.b32.xlu0 %v1603_v9, %s1494_s6 }
0x155b   :  { %669 = vrot.lane.b32.xlu0 %v1633_v52, %s1494_s6 }
0x155f   :  { %893 = vrot.lane.b32.xlu0 %v891_v32, %s1494_s6 }
0x15c5   :  { %v1001_v59 = vpop.permute.xlu0 %1000 }
0x15c6   :  { %v1003_v60 = vmul.f32 %v1411_v43, %v1001_v59 }
0x15c8   :  { %1005 = vrot.lane.b32.xlu1 %v1003_v60, %s1494_s6 }
0x15c9   :  { %v446_v9 = vpop.permute.xlu0 %445 }
0x15ca   :  { %449 = vst.msk [vmem:[#allocation2] sm:$0x4] %vm448_vm7, %v446_v9 }
0x15cd   :  { %v670_v52 = vpop.permute.xlu0 %669 }
0x15ce   :  { %673 = vst.msk [vmem:[#allocation2] sm:$0x10] %vm672_vm8, %v670_v52 }
0x15d1   :  { %v894_v61 = vpop.permute.xlu0 %893 }
0x15d2   :  { %897 = vst.msk [vmem:[#allocation2] sm:$0x40] %vm896_vm9, %v894_v61 }
0x163a   :  { %v1006_v5 = vpop.permute.xlu1 %1005 }
0x163b   :  { %1009 = vst.msk [vmem:[#allocation2] sm:$0x80] %vm1008_vm10, %v1006_v5 }
0x1642   :  { %v1015_v62 = vld [vmem:[#allocation2] sm:$0xff] }
0x1643   :  { %1281 = vmatmul.mubr.msk.f32.vlgmr.msra.gmra.mrb[8].mxu1 %vm124_vm3, %v1015_v62 }
0x1716   :  { %v1089_v63 = vpop.f32.mrb[8].mxu1 }
0x1717   :  { %v1090_v2 = vadd.f32 %v1127_v0, %v1089_v63  ;;  %v1282_v10 = vpop.f32.mrb[9].mxu1 }
0x1719   :  { %1093 = vst [vmem:[#allocation8] sm:$0xff] %v1090_v2 }
0x171a   :  { %1469 = shalt.err (!%p1466_p6)
}
0x171b   :  { %s1470_s12 = scalar_lea.hbm %s1688_s2, 128 }
0x171c   :  { %p1471_p7 = scmp.ne.s32.totalorder %s1688_s2, %s1470_s12  ;;  %p1474_p8 = scmp.lt.u32.totalorder %s1470_s12, %s1688_s2 }
0x171e   :  { %p1476_p9 = pnand %p1474_p8, %p1471_p7 }
0x1720   :  { %1479 = shalt.err (!%p1476_p9)
}
0x1721   :  { %1103 = dma.vmem_to_hbm [thread:$0]  %s1101_s8, 128, %s1688_s2, [#allocation5]  }
0x1722   :  { %1484 = dma.done.wait [#allocation5], 128  }
0x1723   :  { %1485 = vsyncadd [#allocation5], 4294967168 }
0x1724   :  { %1107 = vsyncpa [#allocation4], 1 }
0x1725   :  { %1108 = vsyncpa [#allocation7], 1 }
0x1726   :  { %1109 = vsyncpa [#allocation5], 1 }

</bundles_post_ra>
